<compile_context>
chip_gen: v7x
topology: tpu7x:2x2x1
jax: 0.10.0
libtpu: 0.0.40
codegen_flags: <defaults>
</compile_context>

<pallas_src>
import jax
import jax.numpy as jnp
from jax.experimental import pallas as pl
from jax.experimental.pallas import tpu as pltpu

KH = KW = 3       # conv kernel of the wrapped model
K_PAD = 128       # im2col contraction dim (KH*KW*C) zero-padded to one lane tile
O_PAD = 128       # out-channels zero-padded to one lane tile (lane-dense stores)
TM = 256          # patch-matrix row tile (multiple of MXU 128/256 dims)


def _quantwrap_matmul_kernel(lhs_ref, w_ref, b_ref, o_ref):
    """One fused MXU matmul per row tile: (TM, K_PAD) @ (K_PAD, O_PAD) + bias."""
    # --- QuantStub: identity in eager (pre-convert) mode ---
    # TODO(synk): a converted QuantStub would apply observer-derived affine
    # quantization here (int8 MXU path only for v5e/v6e; on v7x use fp8 or
    # dequant-to-bf16 since its MXU has no integer datapath).
    acc = jnp.dot(lhs_ref[...], w_ref[...],
                  preferred_element_type=jnp.float32)   # single MXU contraction
    acc = acc + b_ref[...]                              # f32 bias epilogue, one pass
    # --- DeQuantStub: identity in eager (pre-convert) mode ---
    o_ref[...] = acc.astype(o_ref.dtype)                # exactly one lane-dense store


@jax.jit
def quant_wrapper_forward(x_nchw, weight, bias):
    """QuantWrapper(Conv2d(C->O, 3x3, padding=1)).forward.  x_nchw: (N,C,H,W) f32."""
    N, C, H, W = x_nchw.shape
    O, Cw, kh, kw = weight.shape
    assert (Cw, kh, kw) == (C, KH, KW)
    K = KH * KW * C
    assert K <= K_PAD and O <= O_PAD
    pad = KH // 2

    # Glue (fused under this jit): NCHW -> NHWC bf16, spatial halo, im2col.
    x = jnp.transpose(x_nchw, (0, 2, 3, 1)).astype(jnp.bfloat16)        # (N,H,W,C)
    xp = jnp.pad(x, ((0, 0), (pad, pad), (pad, pad), (0, 0)))           # (N,H+2,W+2,C)
    windows = [xp[:, dh:dh + H, dw:dw + W, :]
               for dh in range(KH) for dw in range(KW)]
    patches = jnp.concatenate(windows, axis=-1)                         # (N,H,W,K)
    lhs = patches.reshape(N * H * W, K)

    R = N * H * W                                  # batch folded into the row dim
    R_pad = pl.cdiv(R, TM) * TM
    lhs = jnp.pad(lhs, ((0, R_pad - R), (0, K_PAD - K)))                # (R_pad,128) bf16

    # Weights (O,C,KH,KW) -> (K_PAD, O_PAD) bf16, zero padded (exact).
    wt = jnp.transpose(weight, (2, 3, 1, 0)).reshape(K, O)
    wt = jnp.pad(wt, ((0, K_PAD - K), (0, O_PAD - O))).astype(jnp.bfloat16)
    bp = jnp.pad(bias, (0, O_PAD - O)).reshape(1, O_PAD).astype(jnp.float32)

    n_tiles = R_pad // TM                          # 2 parallel tiles here (v7x: both TCs)
    cost = pl.CostEstimate(
        flops=2 * R_pad * K_PAD * O_PAD,
        transcendentals=0,
        bytes_accessed=lhs.size * 2 + wt.size * 2 + bp.size * 4 + R_pad * O_PAD * 2,
    )

    out = pl.pallas_call(
        _quantwrap_matmul_kernel,
        out_shape=jax.ShapeDtypeStruct((R_pad, O_PAD), jnp.bfloat16),
        grid_spec=pltpu.PrefetchScalarGridSpec(
            num_scalar_prefetch=0,
            grid=(n_tiles,),
            in_specs=[
                pl.BlockSpec((TM, K_PAD), lambda i: (i, 0)),
                pl.BlockSpec((K_PAD, O_PAD), lambda i: (0, 0)),
                pl.BlockSpec((1, O_PAD), lambda i: (0, 0)),
            ],
            out_specs=pl.BlockSpec((TM, O_PAD), lambda i: (i, 0)),
        ),
        compiler_params=pltpu.CompilerParams(
            dimension_semantics=("parallel",),     # shard row tiles across v7x's 2 TCs
            vmem_limit_bytes=4 * 1024 * 1024),     # actual usage ~0.5 MiB; honest cap
        cost_estimate=cost,
    )(lhs, wt, bp)

    # Slice off row/out-channel padding, upcast, and return NCHW f32.
    out = out[:R, :O].astype(jnp.float32).reshape(N, H, W, O)
    return jnp.transpose(out, (0, 3, 1, 2))


if __name__ == "__main__":
    key = jax.random.PRNGKey(0)
    kx, kw_, kb = jax.random.split(key, 3)

    # Small shapes: batch=2, in_channels=4, spatial=16x16, out_channels=8.
    N, C, H, W = 2, 4, 16, 16
    O = 8

    x = jax.random.normal(kx, (N, C, H, W), dtype=jnp.float32)

    # Deterministic Kaiming-uniform-like init (matches nn.Conv2d default scale).
    fan_in = C * KH * KW
    bound = 1.0 / (fan_in ** 0.5)
    weight = jax.random.uniform(kw_, (O, C, KH, KW), jnp.float32, -bound, bound)
    bias = jax.random.uniform(kb, (O,), jnp.float32, -bound, bound)

    out = quant_wrapper_forward(x, weight, bias)
    jax.block_until_ready(out)
    assert out.shape == (N, O, H, W)

    # Reference conv using the same bf16-rounded MXU inputs (f32 accumulation).
    x_bf = x.astype(jnp.bfloat16).astype(jnp.float32)
    w_bf = weight.astype(jnp.bfloat16).astype(jnp.float32)
    ref = jax.lax.conv_general_dilated(
        x_bf, w_bf, window_strides=(1, 1), padding="SAME",
        dimension_numbers=("NCHW", "OIHW", "NCHW"),
    ) + bias.reshape(1, O, 1, 1)
    # Kernel writes back bf16 (per perf review), so compare at bf16 precision.
    assert jnp.allclose(out, ref, atol=1e-2, rtol=1e-2), \
        float(jnp.max(jnp.abs(out - ref)))

    print("KERNEL_OK")
</pallas_src>

<mosaic_0001>
module attributes {stable_mosaic.version = 11 : i64} {
  func.func @_quantwrap_matmul_kernel(%arg0: i32, %arg1: memref<256x128xbf16, #tpu.memory_space<vmem>>, %arg2: memref<128x128xbf16, #tpu.memory_space<vmem>>, %arg3: memref<1x128xf32, #tpu.memory_space<vmem>>, %arg4: memref<256x128xbf16, #tpu.memory_space<vmem>>) attributes {dimension_semantics = [#tpu.dimension_semantics<parallel>], iteration_bounds = array<i64: 2>, scalar_prefetch = 0 : i64, scratch_operands = 0 : i64, tpu.core_type = #tpu.core_type<tc>, window_params = [{transform_indices = @transform_0, window_bounds = array<i64: 256, 128>}, {pipeline_mode = #tpu.pipeline_mode<synchronous>, transform_indices = @transform_1, window_bounds = array<i64: 128, 128>}, {pipeline_mode = #tpu.pipeline_mode<synchronous>, transform_indices = @transform_2, window_bounds = array<i64: 1, 128>}, {transform_indices = @transform_3, window_bounds = array<i64: 256, 128>}]} {
    %c0 = arith.constant 0 : index
    %c0_0 = arith.constant 0 : index
    %0 = vector.load %arg1[%c0, %c0_0] : memref<256x128xbf16, #tpu.memory_space<vmem>>, vector<256x128xbf16>
    %c0_1 = arith.constant 0 : index
    %c0_2 = arith.constant 0 : index
    %1 = vector.load %arg2[%c0_1, %c0_2] : memref<128x128xbf16, #tpu.memory_space<vmem>>, vector<128x128xbf16>
    %cst = arith.constant dense<0.000000e+00> : vector<256x128xf32>
    %2 = tpu.matmul %0, %1, %cst {dimension_numbers = #tpu.dot_dimension_numbers<[1], [0], [0], [1], [0, 0, 1, 1], [], []>} : vector<256x128xbf16>, vector<128x128xbf16>, vector<256x128xf32> -> vector<256x128xf32>
    %c0_3 = arith.constant 0 : index
    %c0_4 = arith.constant 0 : index
    %3 = vector.load %arg3[%c0_3, %c0_4] : memref<1x128xf32, #tpu.memory_space<vmem>>, vector<1x128xf32>
    %4 = vector.broadcast %3 : vector<1x128xf32> to vector<256x128xf32>
    %5 = arith.addf %2, %4 : vector<256x128xf32>
    %6 = arith.truncf %5 : vector<256x128xf32> to vector<256x128xbf16>
    %c0_5 = arith.constant 0 : index
    %c0_6 = arith.constant 0 : index
    %7 = vector.load %arg4[%c0_5, %c0_6] : memref<256x128xbf16, #tpu.memory_space<vmem>>, vector<256x128xbf16>
    tpu.vector_store %arg4[%c0_5, %c0_6], %6 {strides = array<i32>} : memref<256x128xbf16, #tpu.memory_space<vmem>>, vector<256x128xbf16>,
    return
  }
  func.func @transform_0(%arg0: i32) -> (i32, i32) {
    %c0_i32 = arith.constant 0 : i32
    %c0_i32_0 = arith.constant 0 : i32
    return %arg0, %c0_i32 : i32, i32
  }
  func.func @transform_1(%arg0: i32) -> (i32, i32) {
    %c0_i32 = arith.constant 0 : i32
    %c0_i32_0 = arith.constant 0 : i32
    %c0_i32_1 = arith.constant 0 : i32
    return %c0_i32, %c0_i32_0 : i32, i32
  }
  func.func @transform_2(%arg0: i32) -> (i32, i32) {
    %c0_i32 = arith.constant 0 : i32
    %c0_i32_0 = arith.constant 0 : i32
    %c0_i32_1 = arith.constant 0 : i32
    return %c0_i32, %c0_i32_0 : i32, i32
  }
  func.func @transform_3(%arg0: i32) -> (i32, i32) {
    %c0_i32 = arith.constant 0 : i32
    %c0_i32_0 = arith.constant 0 : i32
    return %arg0, %c0_i32 : i32, i32
  }
}

</mosaic_0001>

<bundles_post_ra>
// kernel: quant_wrapper_forward.1
= control target key start
LH: loop header
LB: loop body
LE: loop exit
PB: predicated region body
PF: predicated region fallthrough
CT: control target
= control target key end

     0   :  { %s1094_s12 = smov 0   ;;  %s1215_s0 = inlined_call_operand.vmem [shape: bf16[512,128], index: 0, kind: input, shape index: {}]   ;;  %s1216_s1 = inlined_call_operand.vmem [shape: bf16[128,128], index: 1, kind: input, shape index: {}]   ;;  %s1217_s2 = inlined_call_operand.vmem [shape: f32[1,128], index: 2, kind: input, shape index: {}]   ;;  %s1218_s3 = inlined_call_operand.vmem [shape: bf16[512,128], index: 3, kind: output, shape index: {}]  }
   0x1 LB: > { %s751_s13 = sadd.s32 4294967295, %s1072_s12   ;;  %p755_p0 = scmp.ge.s32.totalorder %s1072_s12, 1  ;;  %s1072_s12 = sphi %s1094_s12, %s13_s12  }
   0x2   : > { %p138_p1 = scmp.lt.s32.totalorder %s1072_s12, 3 }
   0x4   : > { %p139_p2 = pnand %p755_p0, %p138_p1 }
   0x5   : > { %v1042_v0 = vld [vmem:[%s1216_s1] sm:$0xff] (!%p139_p2)   ;;  %s756_s16 = sshll.u32 (!%p139_p2), %s751_s13, 5  ;;  %v1043_v1 = vld [vmem:[%s1216_s1 + $0x8] sm:$0xff] (!%p139_p2)   ;;  %v1044_v2 = vld [vmem:[%s1216_s1 + $0x10] sm:$0xff] (!%p139_p2)  }
   0x6   : > { %142 = sbr.rel (%p139_p2) target bundleno = 282 (0x11a), region = 32  ;;  %p163_p3 = scmp.lt.s32.totalorder (!%p139_p2), %s756_s16, 63  ;;  %970 = vmatprep.subr.bf16.mxu0 (!%p139_p2), %v1042_v0  ;;  %1018 = vmatprep.subr.bf16.mxu1 (!%p139_p2), %v1042_v0  ;;  %v1045_v3 = vld [vmem:[%s1216_s1 + $0x18] sm:$0xff] (!%p139_p2)   ;;  %v1046_v6 = vld [vmem:[%s1216_s1 + $0x20] sm:$0xff] (!%p139_p2)   ;;  %v1047_v7 = vld [vmem:[%s1216_s1 + $0x28] sm:$0xff] (!%p139_p2)  }
   0x7   : > { %971 = vmatpush3.bf16.msra.mxu0 (!%p139_p2), %v1042_v0  ;;  %1026 = vmatpush3.bf16.msra.mxu1 (!%p139_p2), %v1042_v0  ;;  %v1048_v8 = vld [vmem:[%s1216_s1 + $0x30] sm:$0xff] (!%p139_p2)   ;;  %v1049_v9 = vld [vmem:[%s1216_s1 + $0x38] sm:$0xff] (!%p139_p2)   ;;  %v1155_v25 = vld [vmem:[%s1217_s2] ss:$0 sm:$0xff] (!%p139_p2) }
   0x8   : > { %972 = vmatprep.subr.bf16.mxu0 (!%p139_p2), %v1043_v1  ;;  %1019 = vmatprep.subr.bf16.mxu1 (!%p139_p2), %v1043_v1 }
   0xb   : > { %973 = vmatpush3.bf16.msra.mxu0 (!%p139_p2), %v1043_v1  ;;  %1027 = vmatpush3.bf16.msra.mxu1 (!%p139_p2), %v1043_v1 }
   0xc   : > { %974 = vmatprep.subr.bf16.mxu0 (!%p139_p2), %v1044_v2  ;;  %1020 = vmatprep.subr.bf16.mxu1 (!%p139_p2), %v1044_v2 }
   0xd   : > { %s1220_s16 = smov (!%p163_p3, %s756_s16), 63 }
   0xe   : > { %s757_s21 = sshll.u32 %s1220_s16, 2 }
   0xf   : > { %s1119_s24 = scalar_lea.vmem %s1215_s0, %s757_s21  ;;  %975 = vmatpush3.bf16.msra.mxu0 %v1044_v2  ;;  %1028 = vmatpush3.bf16.msra.mxu1 %v1044_v2  ;;  %s1168_s13 = scalar_lea.vmem %s1218_s3, %s757_s21 }
  0x10   : > { %v1050_v4 = vld [vmem:[%s1119_s24] sm:$0xff]   ;;  %976 = vmatprep.subr.bf16.mxu0 %v1045_v3  ;;  %1021 = vmatprep.subr.bf16.mxu1 %v1045_v3  ;;  %v1052_v10 = vld [vmem:[%s1119_s24 + $0x8] sm:$0xff]   ;;  %v1054_v12 = vld [vmem:[%s1119_s24 + $0x10] sm:$0xff]  }
  0x11   : > { %v1051_v5 = vld [vmem:[%s1119_s24 + $0x40] sm:$0xff]   ;;  %986 = vmatprep.mubr.bf16.mxu0 %v1050_v4  ;;  %v1053_v11 = vld [vmem:[%s1119_s24 + $0x48] sm:$0xff]   ;;  %v1055_v13 = vld [vmem:[%s1119_s24 + $0x50] sm:$0xff]  }
  0x12   : > { %1002 = vmatprep.mubr.bf16.mxu1 %v1051_v5  ;;  %v1056_v14 = vld [vmem:[%s1119_s24 + $0x18] sm:$0xff]   ;;  %v1058_v16 = vld [vmem:[%s1119_s24 + $0x20] sm:$0xff]   ;;  %v1060_v18 = vld [vmem:[%s1119_s24 + $0x28] sm:$0xff]  }
  0x13   : > { %977 = vmatpush3.bf16.msra.mxu0 %v1045_v3  ;;  %1029 = vmatpush3.bf16.msra.mxu1 %v1045_v3  ;;  %v1057_v15 = vld [vmem:[%s1119_s24 + $0x58] sm:$0xff]   ;;  %v1059_v17 = vld [vmem:[%s1119_s24 + $0x60] sm:$0xff]   ;;  %v1061_v19 = vld [vmem:[%s1119_s24 + $0x68] sm:$0xff]  }
  0x14   : > { %978 = vmatprep.subr.bf16.mxu0 %v1046_v6  ;;  %1022 = vmatprep.subr.bf16.mxu1 %v1046_v6  ;;  %v1062_v20 = vld [vmem:[%s1119_s24 + $0x30] sm:$0xff]   ;;  %v1064_v22 = vld [vmem:[%s1119_s24 + $0x38] sm:$0xff]  }
  0x15   : > { %v1063_v21 = vld [vmem:[%s1119_s24 + $0x70] sm:$0xff]   ;;  %v1065_v23 = vld [vmem:[%s1119_s24 + $0x78] sm:$0xff]  }
  0x17   : > { %979 = vmatpush3.bf16.msra.mxu0 %v1046_v6  ;;  %1030 = vmatpush3.bf16.msra.mxu1 %v1046_v6 }
  0x18   : > { %980 = vmatprep.subr.bf16.mxu0 %v1047_v7  ;;  %1023 = vmatprep.subr.bf16.mxu1 %v1047_v7 }
  0x1b   : > { %981 = vmatpush3.bf16.msra.mxu0 %v1047_v7  ;;  %1031 = vmatpush3.bf16.msra.mxu1 %v1047_v7 }
  0x1c   : > { %982 = vmatprep.subr.bf16.mxu0 %v1048_v8  ;;  %1024 = vmatprep.subr.bf16.mxu1 %v1048_v8 }
  0x1f   : > { %983 = vmatpush3.bf16.msra.mxu0 %v1048_v8  ;;  %1032 = vmatpush3.bf16.msra.mxu1 %v1048_v8 }
  0x20   : > { %984 = vmatprep.subr.bf16.mxu0 %v1049_v9  ;;  %1025 = vmatprep.subr.bf16.mxu1 %v1049_v9 }
  0x23   : > { %985 = vmatpush3.bf16.msra.mxu0 %v1049_v9  ;;  %1033 = vmatpush3.bf16.msra.mxu1 %v1049_v9 }
  0x26   : > { %987 = vmatmul.mubr.bf16.vlgmr.msra.gmra.mrb[0].mxu0 %v1052_v10  ;;  %1003 = vmatmul.mubr.bf16.vlgmr.msra.gmra.mrb[0].mxu1 %v1053_v11 }
  0x27   : > { %990 = vmatprep.mubr.bf16.mxu0 %v1054_v12  ;;  %1006 = vmatprep.mubr.bf16.mxu1 %v1055_v13 }
  0x2e   : > { %991 = vmatmul.mubr.bf16.gmra.mrb[4].mxu0 %v1056_v14  ;;  %1007 = vmatmul.mubr.bf16.gmra.mrb[4].mxu1 %v1057_v15 }
  0x2f   : > { %994 = vmatprep.mubr.bf16.mxu0 %v1058_v16  ;;  %1010 = vmatprep.mubr.bf16.mxu1 %v1059_v17 }
  0x36   : > { %995 = vmatmul.mubr.bf16.gmra.mrb[8].mxu0 %v1060_v18  ;;  %1011 = vmatmul.mubr.bf16.gmra.mrb[8].mxu1 %v1061_v19 }
  0x37   : > { %998 = vmatprep.mubr.bf16.mxu0 %v1062_v20  ;;  %1014 = vmatprep.mubr.bf16.mxu1 %v1063_v21 }
  0x3e   : > { %999 = vmatmul.mubr.bf16.gmra.mrb[12].mxu0 %v1064_v22  ;;  %1015 = vmatmul.mubr.bf16.gmra.mrb[12].mxu1 %v1065_v23 }
  0xf9   : > { %v988_v24 = vpop.f32.mrb[0].mxu0  ;;  %v1004_v26 = vpop.f32.mrb[0].mxu1 }
  0xfa   : > { %v408_v27 = vpop.f32.mrb[1].mxu0  ;;  %v472_v28 = vpop.f32.mrb[1].mxu1  ;;  %v417_v31 = vadd.f32 %v988_v24, %v1155_v25  ;;  %v481_v32 = vadd.f32 %v1004_v26, %v1155_v25 }
  0xfb   : > { %v989_v29 = vpop.f32.mrb[2].mxu0  ;;  %v1005_v30 = vpop.f32.mrb[2].mxu1  ;;  %v409_v37 = vadd.f32 %v1155_v25, %v408_v27  ;;  %v473_v38 = vadd.f32 %v1155_v25, %v472_v28 }
  0xfc   : > { %v420_v33 = vadd.f32 %v989_v29, %v1155_v25  ;;  %v484_v34 = vadd.f32 %v1005_v30, %v1155_v25  ;;  %v411_v35 = vpop.f32.mrb[3].mxu0  ;;  %v475_v36 = vpop.f32.mrb[3].mxu1 }
  0xfd   : > { %v412_v39 = vadd.f32 %v1155_v25, %v411_v35  ;;  %v476_v40 = vadd.f32 %v1155_v25, %v475_v36 }
  0xfe   : > { %v859_v41 = vpack.c.bf16 %v420_v33, %v417_v31  ;;  %v899_v42 = vpack.c.bf16 %v484_v34, %v481_v32 }
  0xff   : > { %v854_v43 = vpack.c.bf16 %v412_v39, %v409_v37  ;;  %v894_v44 = vpack.c.bf16 %v476_v40, %v473_v38 }
 0x100   : > { %931 = vst [vmem:[%s1168_s13 + $0x8] sm:$0xff] %v859_v41   ;;  %939 = vst [vmem:[%s1168_s13 + $0x48] sm:$0xff] %v899_v42  }
 0x101   : > { %855 = vst [vmem:[%s1168_s13] sm:$0xff] %v854_v43   ;;  %938 = vst [vmem:[%s1168_s13 + $0x40] sm:$0xff] %v894_v44   ;;  %v992_v45 = vpop.f32.mrb[4].mxu0  ;;  %v1008_v46 = vpop.f32.mrb[4].mxu1 }
 0x102   : > { %v424_v47 = vpop.f32.mrb[5].mxu0  ;;  %v488_v48 = vpop.f32.mrb[5].mxu1  ;;  %v433_v51 = vadd.f32 %v992_v45, %v1155_v25  ;;  %v497_v52 = vadd.f32 %v1008_v46, %v1155_v25 }
 0x103   : > { %v993_v49 = vpop.f32.mrb[6].mxu0  ;;  %v1009_v50 = vpop.f32.mrb[6].mxu1  ;;  %v425_v57 = vadd.f32 %v1155_v25, %v424_v47  ;;  %v489_v58 = vadd.f32 %v1155_v25, %v488_v48 }
 0x104   : > { %v436_v53 = vadd.f32 %v993_v49, %v1155_v25  ;;  %v500_v54 = vadd.f32 %v1009_v50, %v1155_v25  ;;  %v427_v55 = vpop.f32.mrb[7].mxu0  ;;  %v491_v56 = vpop.f32.mrb[7].mxu1 }
 0x105   : > { %v428_v59 = vadd.f32 %v1155_v25, %v427_v55  ;;  %v492_v60 = vadd.f32 %v1155_v25, %v491_v56 }
 0x106   : > { %v869_v61 = vpack.c.bf16 %v436_v53, %v433_v51  ;;  %v909_v62 = vpack.c.bf16 %v500_v54, %v497_v52 }
 0x107   : > { %v864_v63 = vpack.c.bf16 %v428_v59, %v425_v57  ;;  %v904_v0 = vpack.c.bf16 %v492_v60, %v489_v58 }
 0x108   : > { %933 = vst [vmem:[%s1168_s13 + $0x18] sm:$0xff] %v869_v61   ;;  %941 = vst [vmem:[%s1168_s13 + $0x58] sm:$0xff] %v909_v62  }
 0x109   : > { %932 = vst [vmem:[%s1168_s13 + $0x10] sm:$0xff] %v864_v63   ;;  %940 = vst [vmem:[%s1168_s13 + $0x50] sm:$0xff] %v904_v0   ;;  %v996_v1 = vpop.f32.mrb[8].mxu0  ;;  %v1012_v2 = vpop.f32.mrb[8].mxu1 }
 0x10a   : > { %v440_v3 = vpop.f32.mrb[9].mxu0  ;;  %v504_v4 = vpop.f32.mrb[9].mxu1  ;;  %v449_v7 = vadd.f32 %v996_v1, %v1155_v25  ;;  %v513_v8 = vadd.f32 %v1012_v2, %v1155_v25 }
 0x10b   : > { %v997_v5 = vpop.f32.mrb[10].mxu0  ;;  %v1013_v6 = vpop.f32.mrb[10].mxu1  ;;  %v441_v13 = vadd.f32 %v1155_v25, %v440_v3  ;;  %v505_v14 = vadd.f32 %v1155_v25, %v504_v4 }
 0x10c   : > { %v452_v9 = vadd.f32 %v997_v5, %v1155_v25  ;;  %v516_v10 = vadd.f32 %v1013_v6, %v1155_v25  ;;  %v443_v11 = vpop.f32.mrb[11].mxu0  ;;  %v507_v12 = vpop.f32.mrb[11].mxu1 }
 0x10d   : > { %v444_v15 = vadd.f32 %v1155_v25, %v443_v11  ;;  %v508_v16 = vadd.f32 %v1155_v25, %v507_v12 }
 0x10e   : > { %v879_v17 = vpack.c.bf16 %v452_v9, %v449_v7  ;;  %v919_v18 = vpack.c.bf16 %v516_v10, %v513_v8 }
 0x10f   : > { %v874_v19 = vpack.c.bf16 %v444_v15, %v441_v13  ;;  %v914_v20 = vpack.c.bf16 %v508_v16, %v505_v14 }
 0x110   : > { %935 = vst [vmem:[%s1168_s13 + $0x28] sm:$0xff] %v879_v17   ;;  %943 = vst [vmem:[%s1168_s13 + $0x68] sm:$0xff] %v919_v18  }
 0x111   : > { %934 = vst [vmem:[%s1168_s13 + $0x20] sm:$0xff] %v874_v19   ;;  %942 = vst [vmem:[%s1168_s13 + $0x60] sm:$0xff] %v914_v20   ;;  %v1000_v21 = vpop.f32.mrb[12].mxu0  ;;  %v1016_v22 = vpop.f32.mrb[12].mxu1 }
 0x112   : > { %v456_v23 = vpop.f32.mrb[13].mxu0  ;;  %v520_v24 = vpop.f32.mrb[13].mxu1  ;;  %v465_v28 = vadd.f32 %v1000_v21, %v1155_v25  ;;  %v529_v29 = vadd.f32 %v1016_v22, %v1155_v25 }
 0x113   : > { %v1001_v26 = vpop.f32.mrb[14].mxu0  ;;  %v1017_v27 = vpop.f32.mrb[14].mxu1  ;;  %v457_v34 = vadd.f32 %v1155_v25, %v456_v23  ;;  %v521_v35 = vadd.f32 %v1155_v25, %v520_v24 }
 0x114   : > { %v468_v30 = vadd.f32 %v1001_v26, %v1155_v25  ;;  %v532_v31 = vadd.f32 %v1017_v27, %v1155_v25  ;;  %v459_v32 = vpop.f32.mrb[15].mxu0  ;;  %v523_v33 = vpop.f32.mrb[15].mxu1 }
 0x115   : > { %v460_v36 = vadd.f32 %v1155_v25, %v459_v32  ;;  %v524_v37 = vadd.f32 %v1155_v25, %v523_v33 }
 0x116   : > { %v889_v38 = vpack.c.bf16 %v468_v30, %v465_v28  ;;  %v929_v39 = vpack.c.bf16 %v532_v31, %v529_v29 }
 0x117   : > { %v884_v40 = vpack.c.bf16 %v460_v36, %v457_v34  ;;  %v924_v41 = vpack.c.bf16 %v524_v37, %v521_v35 }
 0x118   : > { %937 = vst [vmem:[%s1168_s13 + $0x38] sm:$0xff] %v889_v38   ;;  %945 = vst [vmem:[%s1168_s13 + $0x78] sm:$0xff] %v929_v39  }
 0x119   : > { %936 = vst [vmem:[%s1168_s13 + $0x30] sm:$0xff] %v884_v40   ;;  %944 = vst [vmem:[%s1168_s13 + $0x70] sm:$0xff] %v924_v41  }
 0x11a PF: > { %s13_s12 = sadd.s32 1, %s1072_s12  }
 0x11b   : > { %p10_p4 = scmp.ge.s32.totalorder %s13_s12, 4  }
 0x11d   :  { %12 = sbr.rel (!%p10_p4) target bundleno = 1 (0x1), region = 62 }

</bundles_post_ra>
